<compile_context>
chip_gen: v7x
topology: tpu7x:2x2x1
jax: 0.10.0
libtpu: 0.0.40
codegen_flags: <defaults>
</compile_context>

<pallas_src>
import functools
import math

import jax
import jax.numpy as jnp
from jax.experimental import pallas as pl
from jax.experimental.pallas import tpu as pltpu

# Row indices into the packed small-vector table (one DMA for all vectors).
VROW_LN1W, VROW_LN1B, VROW_LN2W, VROW_LN2B = 0, 1, 2, 3
VROW_BAP, VROW_BMP, VROW_BFC, VROW_BQKV = 4, 5, 6, 7   # BQKV .. BQKV+n_head-1


# ----------------------------------------------------------------------------
# Kernel: single invocation, whole (B*T, C) slab + all params resident in VMEM.
# ----------------------------------------------------------------------------
def block_kernel(x_ref, vec_ref, w_qkv_ref, w_ap_ref, w_fc_ref, w_mp_ref,
                 out_ref, *, n_head, n_batch, eps=1e-5):
    BT, C = x_ref.shape
    T = BT // n_batch
    hd = C // n_head
    G = n_head * n_batch
    inv_sqrt2 = 1.0 / math.sqrt(2.0)

    x = x_ref[...].astype(jnp.float32)                       # (B*T, C)

    def layer_norm(z, w_row, b_row):
        # one-pass variance: mean(z*z) - mu^2  (one fewer full-slab op/reduce)
        mu = jnp.mean(z, axis=-1, keepdims=True)
        var = jnp.maximum(jnp.mean(z * z, axis=-1, keepdims=True) - mu * mu, 0.0)
        zn = (z - mu) * jax.lax.rsqrt(var + eps)
        return zn * vec_ref[w_row:w_row + 1, 0:C] + vec_ref[b_row:b_row + 1, 0:C]

    # ---------------- LayerNorm 1 ----------------
    xn = layer_norm(x, VROW_LN1W, VROW_LN1B)

    # ---------------- Self-attention (non-causal, dropout = 0) ----------------
    # Per-head qkv projection against head-major stacked weights (1/sqrt(hd)
    # already folded into the q columns).  Each matmul directly yields the
    # per-head (B*T, 3*hd) slab: no lane-axis head slicing of activations.
    blocks = []
    for h in range(n_head):
        z = jnp.dot(xn, w_qkv_ref[h], preferred_element_type=jnp.float32)
        z = z + vec_ref[VROW_BQKV + h:VROW_BQKV + h + 1, 0:3 * hd]
        blocks.append(z)
    qkv = jnp.concatenate(blocks, axis=0)                    # (H*B*T, 3*hd)

    # q/k/v: static lane slices + major-dim regroup only (no cross-lane merge).
    qh = qkv[:, 0 * hd:1 * hd].reshape(G, T, hd)             # (H*B, T, hd)
    kh = qkv[:, 1 * hd:2 * hd].reshape(G, T, hd)
    vh = qkv[:, 2 * hd:3 * hd].reshape(G, T, hd)

    # One batched matmul pair over (head, batch): never crosses batch rows.
    s = jnp.einsum('gqd,gkd->gqk', qh, kh,
                   preferred_element_type=jnp.float32)       # (H*B, T, T)
    m = jnp.max(s, axis=-1, keepdims=True)
    e = jnp.exp(s - m)
    p = e / jnp.sum(e, axis=-1, keepdims=True)               # exact softmax
    yh = jnp.einsum('gqk,gkd->gqd', p, vh,
                    preferred_element_type=jnp.float32)      # (H*B, T, hd)

    # Output projection folded per head:
    #   concat_h(y_h) @ W_ap  ==  sum_h  y_h @ W_ap[h*hd:(h+1)*hd, :]
    # -> no lane-axis re-concatenation of heads.
    att = jnp.dot(yh[0:n_batch].reshape(BT, hd), w_ap_ref[0:hd, :],
                  preferred_element_type=jnp.float32)
    for h in range(1, n_head):
        att = att + jnp.dot(yh[h * n_batch:(h + 1) * n_batch].reshape(BT, hd),
                            w_ap_ref[h * hd:(h + 1) * hd, :],
                            preferred_element_type=jnp.float32)
    att = att + vec_ref[VROW_BAP:VROW_BAP + 1, 0:C]

    x = x + att                                              # residual 1

    # ---------------- LayerNorm 2 + MLP ----------------
    xn2 = layer_norm(x, VROW_LN2W, VROW_LN2B)
    hmid = jnp.dot(xn2, w_fc_ref[...], preferred_element_type=jnp.float32)
    hmid = hmid + vec_ref[VROW_BFC:VROW_BFC + 1, 0:4 * C]    # (B*T, 4C) lane-dense
    hmid = 0.5 * hmid * (1.0 + jax.lax.erf(hmid * inv_sqrt2))  # exact GELU
    mlp = jnp.dot(hmid, w_mp_ref[...], preferred_element_type=jnp.float32)
    mlp = mlp + vec_ref[VROW_BMP:VROW_BMP + 1, 0:C]

    out_ref[...] = (x + mlp).astype(out_ref.dtype)           # residual 2


# ----------------------------------------------------------------------------
# Static (one-time) parameter repacking done in the wrapper, outside the kernel.
# ----------------------------------------------------------------------------
def pack_params(params, *, n_head):
    (ln1_w, ln1_b, w_attn, b_attn, w_ap, b_ap,
     ln2_w, ln2_b, w_fc, b_fc, w_mp, b_mp) = params
    C = w_attn.shape[0]
    hd = C // n_head
    scale = 1.0 / math.sqrt(hd)
    lw = 4 * C                                   # table lane width (>= 4C, 3*hd)

    # Head-major stacked qkv weight (H, C, 3*hd); fold 1/sqrt(hd) into q.
    wq = w_attn[:, 0 * C:1 * C] * scale
    wk = w_attn[:, 1 * C:2 * C]
    wv = w_attn[:, 2 * C:3 * C]
    w_qkv_hm = jnp.stack(
        [jnp.concatenate([wq[:, h * hd:(h + 1) * hd],
                          wk[:, h * hd:(h + 1) * hd],
                          wv[:, h * hd:(h + 1) * hd]], axis=1)
         for h in range(n_head)], axis=0)        # (H, C, 3*hd)

    bq = b_attn[0, 0 * C:1 * C] * scale          # fold scale into q bias too
    bk = b_attn[0, 1 * C:2 * C]
    bv = b_attn[0, 2 * C:3 * C]

    def row(v):
        v = v.reshape(-1)
        return jnp.pad(v, (0, lw - v.shape[0]))

    rows = [row(ln1_w), row(ln1_b), row(ln2_w), row(ln2_b),
            row(b_ap), row(b_mp), row(b_fc)]
    for h in range(n_head):
        rows.append(row(jnp.concatenate([bq[h * hd:(h + 1) * hd],
                                         bk[h * hd:(h + 1) * hd],
                                         bv[h * hd:(h + 1) * hd]])))
    vec_tbl = jnp.stack(rows, axis=0)            # (7 + H, 4C)  -> one DMA

    return vec_tbl, w_qkv_hm, w_ap, w_fc, w_mp


# ----------------------------------------------------------------------------
# Wrapper: no grid — one kernel step for the whole (tiny) problem.
# ----------------------------------------------------------------------------
def transformer_block(x, params, *, n_head):
    B, T, C = x.shape
    BT = B * T
    hd = C // n_head
    x2d = x.reshape(BT, C)                       # free XLA reshape outside kernel
    packed = pack_params(params, n_head=n_head)

    kern = functools.partial(block_kernel, n_head=n_head, n_batch=B)
    vmem = pl.BlockSpec(memory_space=pltpu.MemorySpace.VMEM)

    flops = (2 * BT * C * 3 * C                  # qkv projection
             + 4 * (B * n_head) * T * T * hd     # scores + PV
             + 2 * BT * C * C                    # attention output projection
             + 2 * BT * C * 4 * C                # MLP fc
             + 2 * BT * 4 * C * C)               # MLP proj
    transcendentals = (B * n_head) * T * T + BT * 4 * C + 2 * BT
    bytes_accessed = 4 * (x2d.size + sum(int(p.size) for p in packed) + BT * C)

    out2d = pl.pallas_call(
        kern,
        out_shape=jax.ShapeDtypeStruct((BT, C), x.dtype),
        in_specs=[vmem] * (1 + len(packed)),
        out_specs=vmem,
        cost_estimate=pl.CostEstimate(flops=flops,
                                      transcendentals=transcendentals,
                                      bytes_accessed=bytes_accessed),
    )(x2d, *packed)
    return out2d.reshape(B, T, C)


# ----------------------------------------------------------------------------
# Pure-JAX reference (for correctness check)
# ----------------------------------------------------------------------------
def reference_block(x, params, *, n_head):
    (ln1_w, ln1_b, w_attn, b_attn, w_ap, b_ap,
     ln2_w, ln2_b, w_fc, b_fc, w_mp, b_mp) = params
    B, T, C = x.shape
    hd = C // n_head
    eps = 1e-5

    def ln(z, w, b):
        mu = jnp.mean(z, -1, keepdims=True)
        var = jnp.mean((z - mu) ** 2, -1, keepdims=True)
        return (z - mu) / jnp.sqrt(var + eps) * w[0] + b[0]

    xn = ln(x, ln1_w, ln1_b)
    qkv = xn @ w_attn + b_attn[0]
    q, k, v = jnp.split(qkv, 3, axis=-1)
    q = q.reshape(B, T, n_head, hd).transpose(0, 2, 1, 3)
    k = k.reshape(B, T, n_head, hd).transpose(0, 2, 1, 3)
    v = v.reshape(B, T, n_head, hd).transpose(0, 2, 1, 3)
    s = jnp.einsum('bhtd,bhsd->bhts', q, k) / math.sqrt(hd)
    p = jax.nn.softmax(s, axis=-1)
    y = jnp.einsum('bhts,bhsd->bhtd', p, v)
    y = y.transpose(0, 2, 1, 3).reshape(B, T, C)
    y = y @ w_ap + b_ap[0]
    x = x + y
    xn2 = ln(x, ln2_w, ln2_b)
    h = xn2 @ w_fc + b_fc[0]
    h = 0.5 * h * (1.0 + jax.lax.erf(h / math.sqrt(2.0)))
    h = h @ w_mp + b_mp[0]
    return x + h


# ----------------------------------------------------------------------------
# Main
# ----------------------------------------------------------------------------
if __name__ == "__main__":
    # Small config consistent with the module: n_embd=32, n_head=4, bias=True
    B, T, C, n_head = 2, 8, 32, 4
    key = jax.random.PRNGKey(0)
    ks = jax.random.split(key, 8)

    std = 0.02
    # Linear weights are stored transposed: (in_features, out_features)
    w_attn = jax.random.normal(ks[0], (C, 3 * C), jnp.float32) * std
    b_attn = jnp.zeros((1, 3 * C), jnp.float32) + 0.01
    w_ap = jax.random.normal(ks[1], (C, C), jnp.float32) * std
    b_ap = jnp.zeros((1, C), jnp.float32) + 0.01
    w_fc = jax.random.normal(ks[2], (C, 4 * C), jnp.float32) * std
    b_fc = jnp.zeros((1, 4 * C), jnp.float32) + 0.01
    w_mp = jax.random.normal(ks[3], (4 * C, C), jnp.float32) * std
    b_mp = jnp.zeros((1, C), jnp.float32) + 0.01
    ln1_w = jnp.ones((1, C), jnp.float32)
    ln1_b = jnp.zeros((1, C), jnp.float32)
    ln2_w = jnp.ones((1, C), jnp.float32)
    ln2_b = jnp.zeros((1, C), jnp.float32)

    params = (ln1_w, ln1_b, w_attn, b_attn, w_ap, b_ap,
              ln2_w, ln2_b, w_fc, b_fc, w_mp, b_mp)

    x = jax.random.normal(ks[4], (B, T, C), jnp.float32)

    out = transformer_block(x, params, n_head=n_head)
    out = jax.block_until_ready(out)

    ref = reference_block(x, params, n_head=n_head)
    # Exact softmax reciprocal is used, so the only deviations are f32 rounding /
    # summation-order differences (expected ~1e-6).
    assert jnp.allclose(out, ref, atol=1e-4, rtol=1e-4), "mismatch vs reference"

    print("KERNEL_OK")
</pallas_src>

<mosaic_0001>
module attributes {stable_mosaic.version = 11 : i64} {
  func.func @block_kernel(%arg0: memref<16x32xf32, #tpu.memory_space<vmem>>, %arg1: memref<11x128xf32, #tpu.memory_space<vmem>>, %arg2: memref<4x32x24xf32, #tpu.memory_space<vmem>>, %arg3: memref<32x32xf32, #tpu.memory_space<vmem>>, %arg4: memref<32x128xf32, #tpu.memory_space<vmem>>, %arg5: memref<128x32xf32, #tpu.memory_space<vmem>>, %arg6: memref<16x32xf32, #tpu.memory_space<vmem>>) attributes {dimension_semantics = [], scalar_prefetch = 0 : i64, scratch_operands = 0 : i64, tpu.core_type = #tpu.core_type<tc>} {
    %c0 = arith.constant 0 : index
    %c0_0 = arith.constant 0 : index
    %0 = vector.load %arg0[%c0, %c0_0] : memref<16x32xf32, #tpu.memory_space<vmem>>, vector<16x32xf32>
    %cst = arith.constant dense<0.000000e+00> : vector<16xf32>
    %1 = vector.multi_reduction <add>, %0, %cst [1] : vector<16x32xf32> to vector<16xf32>
    %2 = vector.shape_cast %1 : vector<16xf32> to vector<16x1xf32>
    %cst_1 = arith.constant 3.200000e+01 : f32
    %3 = vector.broadcast %cst_1 : f32 to vector<16x1xf32>
    %4 = arith.divf %2, %3 : vector<16x1xf32>
    %5 = arith.mulf %0, %0 : vector<16x32xf32>
    %cst_2 = arith.constant dense<0.000000e+00> : vector<16xf32>
    %6 = vector.multi_reduction <add>, %5, %cst_2 [1] : vector<16x32xf32> to vector<16xf32>
    %7 = vector.shape_cast %6 : vector<16xf32> to vector<16x1xf32>
    %cst_3 = arith.constant 3.200000e+01 : f32
    %8 = vector.broadcast %cst_3 : f32 to vector<16x1xf32>
    %9 = arith.divf %7, %8 : vector<16x1xf32>
    %10 = arith.mulf %4, %4 : vector<16x1xf32>
    %11 = arith.subf %9, %10 : vector<16x1xf32>
    %cst_4 = arith.constant 0.000000e+00 : f32
    %12 = vector.broadcast %cst_4 : f32 to vector<16x1xf32>
    %13 = arith.maximumf %11, %12 : vector<16x1xf32>
    %14 = vector.broadcast %4 : vector<16x1xf32> to vector<16x32xf32>
    %15 = arith.subf %0, %14 : vector<16x32xf32>
    %cst_5 = arith.constant 9.99999974E-6 : f32
    %16 = vector.broadcast %cst_5 : f32 to vector<16x1xf32>
    %17 = arith.addf %13, %16 : vector<16x1xf32>
    %18 = math.rsqrt %17 : vector<16x1xf32>
    %19 = vector.broadcast %18 : vector<16x1xf32> to vector<16x32xf32>
    %20 = arith.mulf %15, %19 : vector<16x32xf32>
    %c0_6 = arith.constant 0 : index
    %c0_7 = arith.constant 0 : index
    %21 = vector.load %arg1[%c0_6, %c0_7] : memref<11x128xf32, #tpu.memory_space<vmem>>, vector<1x32xf32>
    %22 = vector.broadcast %21 : vector<1x32xf32> to vector<16x32xf32>
    %23 = arith.mulf %20, %22 : vector<16x32xf32>
    %c1 = arith.constant 1 : index
    %c0_8 = arith.constant 0 : index
    %24 = vector.load %arg1[%c1, %c0_8] : memref<11x128xf32, #tpu.memory_space<vmem>>, vector<1x32xf32>
    %25 = vector.broadcast %24 : vector<1x32xf32> to vector<16x32xf32>
    %26 = arith.addf %23, %25 : vector<16x32xf32>
    %c0_9 = arith.constant 0 : index
    %c0_10 = arith.constant 0 : index
    %c0_11 = arith.constant 0 : index
    %27 = vector.load %arg2[%c0_9, %c0_10, %c0_11] : memref<4x32x24xf32, #tpu.memory_space<vmem>>, vector<1x32x24xf32>
    %28 = vector.shape_cast %27 : vector<1x32x24xf32> to vector<32x24xf32>
    %cst_12 = arith.constant dense<0.000000e+00> : vector<16x24xf32>
    %29 = tpu.matmul %26, %28, %cst_12 {dimension_numbers = #tpu.dot_dimension_numbers<[1], [0], [0], [1], [0, 0, 1, 1], [], []>} : vector<16x32xf32>, vector<32x24xf32>, vector<16x24xf32> -> vector<16x24xf32>
    %c7 = arith.constant 7 : index
    %c0_13 = arith.constant 0 : index
    %30 = vector.load %arg1[%c7, %c0_13] : memref<11x128xf32, #tpu.memory_space<vmem>>, vector<1x24xf32>
    %31 = vector.broadcast %30 : vector<1x24xf32> to vector<16x24xf32>
    %32 = arith.addf %29, %31 : vector<16x24xf32>
    %c1_14 = arith.constant 1 : index
    %c0_15 = arith.constant 0 : index
    %c0_16 = arith.constant 0 : index
    %33 = vector.load %arg2[%c1_14, %c0_15, %c0_16] : memref<4x32x24xf32, #tpu.memory_space<vmem>>, vector<1x32x24xf32>
    %34 = vector.shape_cast %33 : vector<1x32x24xf32> to vector<32x24xf32>
    %cst_17 = arith.constant dense<0.000000e+00> : vector<16x24xf32>
    %35 = tpu.matmul %26, %34, %cst_17 {dimension_numbers = #tpu.dot_dimension_numbers<[1], [0], [0], [1], [0, 0, 1, 1], [], []>} : vector<16x32xf32>, vector<32x24xf32>, vector<16x24xf32> -> vector<16x24xf32>
    %c8 = arith.constant 8 : index
    %c0_18 = arith.constant 0 : index
    %36 = vector.load %arg1[%c8, %c0_18] : memref<11x128xf32, #tpu.memory_space<vmem>>, vector<1x24xf32>
    %37 = vector.broadcast %36 : vector<1x24xf32> to vector<16x24xf32>
    %38 = arith.addf %35, %37 : vector<16x24xf32>
    %c2 = arith.constant 2 : index
    %c0_19 = arith.constant 0 : index
    %c0_20 = arith.constant 0 : index
    %39 = vector.load %arg2[%c2, %c0_19, %c0_20] : memref<4x32x24xf32, #tpu.memory_space<vmem>>, vector<1x32x24xf32>
    %40 = vector.shape_cast %39 : vector<1x32x24xf32> to vector<32x24xf32>
    %cst_21 = arith.constant dense<0.000000e+00> : vector<16x24xf32>
    %41 = tpu.matmul %26, %40, %cst_21 {dimension_numbers = #tpu.dot_dimension_numbers<[1], [0], [0], [1], [0, 0, 1, 1], [], []>} : vector<16x32xf32>, vector<32x24xf32>, vector<16x24xf32> -> vector<16x24xf32>
    %c9 = arith.constant 9 : index
    %c0_22 = arith.constant 0 : index
    %42 = vector.load %arg1[%c9, %c0_22] : memref<11x128xf32, #tpu.memory_space<vmem>>, vector<1x24xf32>
    %43 = vector.broadcast %42 : vector<1x24xf32> to vector<16x24xf32>
    %44 = arith.addf %41, %43 : vector<16x24xf32>
    %c3 = arith.constant 3 : index
    %c0_23 = arith.constant 0 : index
    %c0_24 = arith.constant 0 : index
    %45 = vector.load %arg2[%c3, %c0_23, %c0_24] : memref<4x32x24xf32, #tpu.memory_space<vmem>>, vector<1x32x24xf32>
    %46 = vector.shape_cast %45 : vector<1x32x24xf32> to vector<32x24xf32>
    %cst_25 = arith.constant dense<0.000000e+00> : vector<16x24xf32>
    %47 = tpu.matmul %26, %46, %cst_25 {dimension_numbers = #tpu.dot_dimension_numbers<[1], [0], [0], [1], [0, 0, 1, 1], [], []>} : vector<16x32xf32>, vector<32x24xf32>, vector<16x24xf32> -> vector<16x24xf32>
    %c10 = arith.constant 10 : index
    %c0_26 = arith.constant 0 : index
    %48 = vector.load %arg1[%c10, %c0_26] : memref<11x128xf32, #tpu.memory_space<vmem>>, vector<1x24xf32>
    %49 = vector.broadcast %48 : vector<1x24xf32> to vector<16x24xf32>
    %50 = arith.addf %47, %49 : vector<16x24xf32>
    %51 = tpu.concatenate %32, %38, %44, %50 in 0 : vector<16x24xf32>, vector<16x24xf32>, vector<16x24xf32>, vector<16x24xf32> -> vector<64x24xf32>
    %52 = vector.extract_strided_slice %51 {offsets = [0, 0], sizes = [64, 8], strides = [1, 1]} : vector<64x24xf32> to vector<64x8xf32>
    %53 = vector.shape_cast %52 : vector<64x8xf32> to vector<8x8x8xf32>
    %54 = vector.extract_strided_slice %51 {offsets = [0, 8], sizes = [64, 8], strides = [1, 1]} : vector<64x24xf32> to vector<64x8xf32>
    %55 = vector.shape_cast %54 : vector<64x8xf32> to vector<8x8x8xf32>
    %56 = vector.extract_strided_slice %51 {offsets = [0, 16], sizes = [64, 8], strides = [1, 1]} : vector<64x24xf32> to vector<64x8xf32>
    %57 = vector.shape_cast %56 : vector<64x8xf32> to vector<8x8x8xf32>
    "tpu.trace_start"() <{level = 10 : i32, message = "gqd,gkd->gqk"}> : () -> ()
    %cst_27 = arith.constant dense<0.000000e+00> : vector<8x8x8xf32>
    %58 = tpu.matmul %53, %55, %cst_27 {dimension_numbers = #tpu.dot_dimension_numbers<[2], [2], [1], [1], [0, 0, 0, 1, 1, 1], [0], [0]>} : vector<8x8x8xf32>, vector<8x8x8xf32>, vector<8x8x8xf32> -> vector<8x8x8xf32>
    "tpu.trace_stop"() : () -> ()
    %cst_28 = arith.constant dense<0xFF800000> : vector<8x8xf32>
    %59 = vector.multi_reduction <maximumf>, %58, %cst_28 [2] : vector<8x8x8xf32> to vector<8x8xf32>
    %60 = vector.shape_cast %59 : vector<8x8xf32> to vector<8x8x1xf32>
    %61 = vector.broadcast %60 : vector<8x8x1xf32> to vector<8x8x8xf32>
    %62 = arith.subf %58, %61 : vector<8x8x8xf32>
    %63 = math.exp %62 : vector<8x8x8xf32>
    %cst_29 = arith.constant dense<0.000000e+00> : vector<8x8xf32>
    %64 = vector.multi_reduction <add>, %63, %cst_29 [2] : vector<8x8x8xf32> to vector<8x8xf32>
    %65 = vector.shape_cast %64 : vector<8x8xf32> to vector<8x8x1xf32>
    %66 = vector.broadcast %65 : vector<8x8x1xf32> to vector<8x8x8xf32>
    %67 = arith.divf %63, %66 : vector<8x8x8xf32>
    "tpu.trace_start"() <{level = 10 : i32, message = "gqk,gkd->gqd"}> : () -> ()
    %cst_30 = arith.constant dense<0.000000e+00> : vector<8x8x8xf32>
    %68 = tpu.matmul %67, %57, %cst_30 {dimension_numbers = #tpu.dot_dimension_numbers<[2], [1], [1], [2], [0, 0, 0, 1, 1, 2], [0], [0]>} : vector<8x8x8xf32>, vector<8x8x8xf32>, vector<8x8x8xf32> -> vector<8x8x8xf32>
    "tpu.trace_stop"() : () -> ()
    %69 = vector.extract_strided_slice %68 {offsets = [0, 0, 0], sizes = [2, 8, 8], strides = [1, 1, 1]} : vector<8x8x8xf32> to vector<2x8x8xf32>
    %70 = vector.shape_cast %69 : vector<2x8x8xf32> to vector<16x8xf32>
    %c0_31 = arith.constant 0 : index
    %c0_32 = arith.constant 0 : index
    %71 = vector.load %arg3[%c0_31, %c0_32] : memref<32x32xf32, #tpu.memory_space<vmem>>, vector<8x32xf32>
    %cst_33 = arith.constant dense<0.000000e+00> : vector<16x32xf32>
    %72 = tpu.matmul %70, %71, %cst_33 {dimension_numbers = #tpu.dot_dimension_numbers<[1], [0], [0], [1], [0, 0, 1, 1], [], []>} : vector<16x8xf32>, vector<8x32xf32>, vector<16x32xf32> -> vector<16x32xf32>
    %73 = vector.extract_strided_slice %68 {offsets = [2, 0, 0], sizes = [2, 8, 8], strides = [1, 1, 1]} : vector<8x8x8xf32> to vector<2x8x8xf32>
    %74 = vector.shape_cast %73 : vector<2x8x8xf32> to vector<16x8xf32>
    %c8_34 = arith.constant 8 : index
    %c0_35 = arith.constant 0 : index
    %75 = vector.load %arg3[%c8_34, %c0_35] : memref<32x32xf32, #tpu.memory_space<vmem>>, vector<8x32xf32>
    %cst_36 = arith.constant dense<0.000000e+00> : vector<16x32xf32>
    %76 = tpu.matmul %74, %75, %cst_36 {dimension_numbers = #tpu.dot_dimension_numbers<[1], [0], [0], [1], [0, 0, 1, 1], [], []>} : vector<16x8xf32>, vector<8x32xf32>, vector<16x32xf32> -> vector<16x32xf32>
    %77 = arith.addf %72, %76 : vector<16x32xf32>
    %78 = vector.extract_strided_slice %68 {offsets = [4, 0, 0], sizes = [2, 8, 8], strides = [1, 1, 1]} : vector<8x8x8xf32> to vector<2x8x8xf32>
    %79 = vector.shape_cast %78 : vector<2x8x8xf32> to vector<16x8xf32>
    %c16 = arith.constant 16 : index
    %c0_37 = arith.constant 0 : index
    %80 = vector.load %arg3[%c16, %c0_37] : memref<32x32xf32, #tpu.memory_space<vmem>>, vector<8x32xf32>
    %cst_38 = arith.constant dense<0.000000e+00> : vector<16x32xf32>
    %81 = tpu.matmul %79, %80, %cst_38 {dimension_numbers = #tpu.dot_dimension_numbers<[1], [0], [0], [1], [0, 0, 1, 1], [], []>} : vector<16x8xf32>, vector<8x32xf32>, vector<16x32xf32> -> vector<16x32xf32>
    %82 = arith.addf %77, %81 : vector<16x32xf32>
    %83 = vector.extract_strided_slice %68 {offsets = [6, 0, 0], sizes = [2, 8, 8], strides = [1, 1, 1]} : vector<8x8x8xf32> to vector<2x8x8xf32>
    %84 = vector.shape_cast %83 : vector<2x8x8xf32> to vector<16x8xf32>
    %c24 = arith.constant 24 : index
    %c0_39 = arith.constant 0 : index
    %85 = vector.load %arg3[%c24, %c0_39] : memref<32x32xf32, #tpu.memory_space<vmem>>, vector<8x32xf32>
    %cst_40 = arith.constant dense<0.000000e+00> : vector<16x32xf32>
    %86 = tpu.matmul %84, %85, %cst_40 {dimension_numbers = #tpu.dot_dimension_numbers<[1], [0], [0], [1], [0, 0, 1, 1], [], []>} : vector<16x8xf32>, vector<8x32xf32>, vector<16x32xf32> -> vector<16x32xf32>
    %87 = arith.addf %82, %86 : vector<16x32xf32>
    %c4 = arith.constant 4 : index
    %c0_41 = arith.constant 0 : index
    %88 = vector.load %arg1[%c4, %c0_41] : memref<11x128xf32, #tpu.memory_space<vmem>>, vector<1x32xf32>
    %89 = vector.broadcast %88 : vector<1x32xf32> to vector<16x32xf32>
    %90 = arith.addf %87, %89 : vector<16x32xf32>
    %91 = arith.addf %0, %90 : vector<16x32xf32>
    %cst_42 = arith.constant dense<0.000000e+00> : vector<16xf32>
    %92 = vector.multi_reduction <add>, %91, %cst_42 [1] : vector<16x32xf32> to vector<16xf32>
    %93 = vector.shape_cast %92 : vector<16xf32> to vector<16x1xf32>
    %cst_43 = arith.constant 3.200000e+01 : f32
    %94 = vector.broadcast %cst_43 : f32 to vector<16x1xf32>
    %95 = arith.divf %93, %94 : vector<16x1xf32>
    %96 = arith.mulf %91, %91 : vector<16x32xf32>
    %cst_44 = arith.constant dense<0.000000e+00> : vector<16xf32>
    %97 = vector.multi_reduction <add>, %96, %cst_44 [1] : vector<16x32xf32> to vector<16xf32>
    %98 = vector.shape_cast %97 : vector<16xf32> to vector<16x1xf32>
    %cst_45 = arith.constant 3.200000e+01 : f32
    %99 = vector.broadcast %cst_45 : f32 to vector<16x1xf32>
    %100 = arith.divf %98, %99 : vector<16x1xf32>
    %101 = arith.mulf %95, %95 : vector<16x1xf32>
    %102 = arith.subf %100, %101 : vector<16x1xf32>
    %cst_46 = arith.constant 0.000000e+00 : f32
    %103 = vector.broadcast %cst_46 : f32 to vector<16x1xf32>
    %104 = arith.maximumf %102, %103 : vector<16x1xf32>
    %105 = vector.broadcast %95 : vector<16x1xf32> to vector<16x32xf32>
    %106 = arith.subf %91, %105 : vector<16x32xf32>
    %cst_47 = arith.constant 9.99999974E-6 : f32
    %107 = vector.broadcast %cst_47 : f32 to vector<16x1xf32>
    %108 = arith.addf %104, %107 : vector<16x1xf32>
    %109 = math.rsqrt %108 : vector<16x1xf32>
    %110 = vector.broadcast %109 : vector<16x1xf32> to vector<16x32xf32>
    %111 = arith.mulf %106, %110 : vector<16x32xf32>
    %c2_48 = arith.constant 2 : index
    %c0_49 = arith.constant 0 : index
    %112 = vector.load %arg1[%c2_48, %c0_49] : memref<11x128xf32, #tpu.memory_space<vmem>>, vector<1x32xf32>
    %113 = vector.broadcast %112 : vector<1x32xf32> to vector<16x32xf32>
    %114 = arith.mulf %111, %113 : vector<16x32xf32>
    %c3_50 = arith.constant 3 : index
    %c0_51 = arith.constant 0 : index
    %115 = vector.load %arg1[%c3_50, %c0_51] : memref<11x128xf32, #tpu.memory_space<vmem>>, vector<1x32xf32>
    %116 = vector.broadcast %115 : vector<1x32xf32> to vector<16x32xf32>
    %117 = arith.addf %114, %116 : vector<16x32xf32>
    %c0_52 = arith.constant 0 : index
    %c0_53 = arith.constant 0 : index
    %118 = vector.load %arg4[%c0_52, %c0_53] : memref<32x128xf32, #tpu.memory_space<vmem>>, vector<32x128xf32>
    %cst_54 = arith.constant dense<0.000000e+00> : vector<16x128xf32>
    %119 = tpu.matmul %117, %118, %cst_54 {dimension_numbers = #tpu.dot_dimension_numbers<[1], [0], [0], [1], [0, 0, 1, 1], [], []>} : vector<16x32xf32>, vector<32x128xf32>, vector<16x128xf32> -> vector<16x128xf32>
    %c6 = arith.constant 6 : index
    %c0_55 = arith.constant 0 : index
    %120 = vector.load %arg1[%c6, %c0_55] : memref<11x128xf32, #tpu.memory_space<vmem>>, vector<1x128xf32>
    %121 = vector.broadcast %120 : vector<1x128xf32> to vector<16x128xf32>
    %122 = arith.addf %119, %121 : vector<16x128xf32>
    %cst_56 = arith.constant 5.000000e-01 : f32
    %123 = vector.broadcast %cst_56 : f32 to vector<16x128xf32>
    %124 = arith.mulf %123, %122 : vector<16x128xf32>
    %cst_57 = arith.constant 0.707106769 : f32
    %125 = vector.broadcast %cst_57 : f32 to vector<16x128xf32>
    %126 = arith.mulf %122, %125 : vector<16x128xf32>
    %127 = math.erf %126 : vector<16x128xf32>
    %cst_58 = arith.constant 1.000000e+00 : f32
    %128 = vector.broadcast %cst_58 : f32 to vector<16x128xf32>
    %129 = arith.addf %128, %127 : vector<16x128xf32>
    %130 = arith.mulf %124, %129 : vector<16x128xf32>
    %c0_59 = arith.constant 0 : index
    %c0_60 = arith.constant 0 : index
    %131 = vector.load %arg5[%c0_59, %c0_60] : memref<128x32xf32, #tpu.memory_space<vmem>>, vector<128x32xf32>
    %cst_61 = arith.constant dense<0.000000e+00> : vector<16x32xf32>
    %132 = tpu.matmul %130, %131, %cst_61 {dimension_numbers = #tpu.dot_dimension_numbers<[1], [0], [0], [1], [0, 0, 1, 1], [], []>} : vector<16x128xf32>, vector<128x32xf32>, vector<16x32xf32> -> vector<16x32xf32>
    %c5 = arith.constant 5 : index
    %c0_62 = arith.constant 0 : index
    %133 = vector.load %arg1[%c5, %c0_62] : memref<11x128xf32, #tpu.memory_space<vmem>>, vector<1x32xf32>
    %134 = vector.broadcast %133 : vector<1x32xf32> to vector<16x32xf32>
    %135 = arith.addf %132, %134 : vector<16x32xf32>
    %136 = arith.addf %91, %135 : vector<16x32xf32>
    %c0_63 = arith.constant 0 : index
    %c0_64 = arith.constant 0 : index
    %137 = vector.load %arg6[%c0_63, %c0_64] : memref<16x32xf32, #tpu.memory_space<vmem>>, vector<16x32xf32>
    tpu.vector_store %arg6[%c0_63, %c0_64], %136 {strides = array<i32>} : memref<16x32xf32, #tpu.memory_space<vmem>>, vector<16x32xf32>,
    return
  }
}

</mosaic_0001>

<bundles_post_ra>
// kernel: tpu_custom_call.1
= control target key start
LH: loop header
LB: loop body
LE: loop exit
PB: predicated region body
PF: predicated region fallthrough
CT: control target
= control target key end

     0   :  { %vm26_vm0 = vcmask 261120   ;;  %s3272_s0 = inlined_call_operand.vmem [shape: f32[16,32], index: 0, kind: input, shape index: {}]   ;;  %s3273_s1 = inlined_call_operand.vmem [shape: f32[11,128], index: 1, kind: input, shape index: {}]   ;;  %s3274_s2 = inlined_call_operand.vmem [shape: f32[4,32,24], index: 2, kind: input, shape index: {}]   ;;  %s3275_s3 = inlined_call_operand.vmem [shape: f32[32,32], index: 3, kind: input, shape index: {}]   ;;  %s3276_s4 = inlined_call_operand.vmem [shape: f32[32,128], index: 4, kind: input, shape index: {}]   ;;  %s3277_s5 = inlined_call_operand.vmem [shape: f32[128,32], index: 5, kind: input, shape index: {}]   ;;  %s3278_s6 = inlined_call_operand.hbm [shape: f32[16,32], index: 6, kind: output, shape index: {}]  }
   0x1   :  { %v2880_v0 = vld [vmem:[%s3272_s0] sm:$0xff]  ;;  %v2885_v1 = vld [vmem:[%s3272_s0 + $0x8] sm:$0xff] }
   0x2   :  { %11 = vsyncpa [#allocation3], 0  ;;  %v27_v2 = vsel %vm26_vm0, %v2880_v0, 0.0  ;;  %v36_v3 = vmul.f32 %v2880_v0, %v2880_v0  ;;  %v37_v4 = vmul.f32 %v2885_v1, %v2885_v1  ;;  %v30_v6 = vsel %vm26_vm0, %v2885_v1, 0.0  ;;  %v74_v8 = vld [vmem:[%s3274_s2] sm:$0xff]  ;;  %v75_v9 = vld [vmem:[%s3274_s2 + $0x8] sm:$0xff] }
   0x3   :  { %28 = vadd.xlane.f32.xlu0 %v27_v2  ;;  %v2354_v10 = vld [vmem:[%s3274_s2 + $0x60] sm:$0xff]  ;;  %v2682_v11 = vpack.c.bf16 %v75_v9, %v74_v8  ;;  %v2355_v12 = vld [vmem:[%s3274_s2 + $0x68] sm:$0xff]  ;;  %v76_v13 = vld [vmem:[%s3274_s2 + $0x10] sm:$0xff]  ;;  %v2835_v60 = vmov 0.0   ;;  %vm2836_vm1 = vmmov 0   ;;  %s2837_s12 = smov 120  }
   0x4   :  { %v38_v5 = vsel %vm26_vm0, %v36_v3, 0.0  ;;  %v41_v7 = vsel %vm26_vm0, %v37_v4, 0.0  ;;  %v77_v14 = vld [vmem:[%s3274_s2 + $0x18] sm:$0xff]  ;;  %v2706_v15 = vpack.c.bf16 %v2355_v12, %v2354_v10  ;;  %v2356_v17 = vld [vmem:[%s3274_s2 + $0x70] sm:$0xff]  ;;  %v2340_v20 = vld [vmem:[%s3274_s2 + $0x20] sm:$0xff]  ;;  %vm422_vm2 = vcmask 64512  }
   0x5   :  { %39 = vadd.xlane.f32.xlu1 %v38_v5  ;;  %v2686_v16 = vpack.c.bf16 %v77_v14, %v76_v13  ;;  %2683 = vmatprep.subr.bf16.mxu0 %v2682_v11  ;;  %v2357_v18 = vld [vmem:[%s3274_s2 + $0x78] sm:$0xff]  ;;  %v2341_v21 = vld [vmem:[%s3274_s2 + $0x28] sm:$0xff]  ;;  %v2335_v41 = vld [vmem:[%s3273_s1] ss:$0 sm:$0xff]  ;;  %s2838_s19 = smov 112   ;;  %s2839_s21 = smov [#allocation2]  }
   0x6   :  { %2685 = vmatpush3.bf16.msra.mxu0 %v2682_v11  ;;  %2707 = vmatprep.subr.bf16.mxu1 %v2706_v15  ;;  %v2710_v19 = vpack.c.bf16 %v2357_v18, %v2356_v17  ;;  %v2690_v22 = vpack.c.bf16 %v2341_v21, %v2340_v20  ;;  %v2336_v43 = vld [vmem:[%s3273_s1 + $0x1] ss:$0 sm:$0xff]  ;;  %v2342_v49 = vld [vmem:[%s3274_s2 + $0x30] sm:$0xff]  ;;  %v2343_v50 = vld [vmem:[%s3274_s2 + $0x38] sm:$0xff]  ;;  %s2324_s22 = sshll.u32 %s2839_s21, 4  ;;  %s2325_s22 = int_to_ptr.vmem [resolvable:$true] %s2324_s22 }
   0x7   :  { %31 = vadd.xlane.f32.xlu0 %v30_v6  ;;  %2709 = vmatpush3.bf16.msra.mxu1 %v2706_v15  ;;  %v2694_v53 = vpack.c.bf16 %v2343_v50, %v2342_v49  ;;  %v2347_v54 = vld [vmem:[%s3274_s2 + $0x40] sm:$0xff]  ;;  %v2348_v55 = vld [vmem:[%s3274_s2 + $0x48] sm:$0xff]  ;;  %v2349_v57 = vld [vmem:[%s3274_s2 + $0x50] sm:$0xff]  ;;  %s2811_s23 = scalar_lea.vmem %s2325_s22, 256  ;;  %p2816_p1 = scmp.lt.s32.totalorder %s2325_s22, %s2325_s22 }
   0x8   :  { %2687 = vmatprep.subr.bf16.mxu0 %v2686_v16  ;;  %2711 = vmatprep.subr.bf16.mxu1 %v2710_v19  ;;  %v2698_v56 = vpack.c.bf16 %v2348_v55, %v2347_v54  ;;  %v2350_v58 = vld [vmem:[%s3274_s2 + $0x58] sm:$0xff]  ;;  %v2337_v61 = vld [vmem:[%s3273_s1 + $0x7] ss:$0 sm:$0xff]  ;;  %v2344_v6 = vld [vmem:[%s3273_s1 + $0x8] ss:$0 sm:$0xff]  ;;  %p2812_p0 = scmp.ne.s32.totalorder %s2325_s22, %s2811_s23  ;;  %p2817_p2 = scmp.lt.s32.totalorder %s2811_s23, %s2811_s23 }
   0x9   :  { %42 = vadd.xlane.f32.xlu1 %v41_v7  ;;  %v2702_v59 = vpack.c.bf16 %v2350_v58, %v2349_v57  ;;  %v2351_v11 = vld [vmem:[%s3273_s1 + $0x9] ss:$0 sm:$0xff] }
   0xa   :  { %2689 = vmatpush3.bf16.msra.mxu0 %v2686_v16  ;;  %v2358_v16 = vld [vmem:[%s3273_s1 + $0xa] ss:$0 sm:$0xff]  ;;  %p2818_p3 = por %p2817_p2, %p2816_p1 }
   0xb   :  { %2713 = vmatpush3.bf16.msra.mxu1 %v2710_v19  ;;  %2691 = vmatprep.subr.bf16.mxu0 %v2690_v22 }
   0xc   :  { %2551 = vmatprep.subr.mxu1 %v2835_v60  ;;  %p2819_p4 = pnand %p2818_p3, %p2812_p0 }
  0x90   :  { %v29_v23 = vpop.xlane.xlu0 %28 }
  0x91   :  { %v34_v24 = vmul.f32 0.03125, %v29_v23 }
  0x92   :  { %v40_v25 = vpop.xlane.xlu1 %39 }
  0x93   :  { %v46_v26 = vmul.f32 %v34_v24, %v34_v24  ;;  %v44_v27 = vmul.f32 0.03125, %v40_v25  ;;  %v52_v39 = vsub.f32 %v2880_v0, %v34_v24 }
  0x94   :  { %v32_v28 = vpop.xlane.xlu0 %31 }
  0x95   :  { %v48_v29 = vsub.f32 %v44_v27, %v46_v26  ;;  %v35_v30 = vmul.f32 0.03125, %v32_v28 }
  0x96   :  { %v43_v31 = vpop.xlane.xlu1 %42 }
  0x97   :  { %v50_v32 = vmax.f32 %v48_v29, 0.0  ;;  %v47_v33 = vmul.f32 %v35_v30, %v35_v30  ;;  %v45_v34 = vmul.f32 0.03125, %v43_v31  ;;  %v53_v44 = vsub.f32 %v2885_v1, %v35_v30 }
  0x99   :  { %v54_v35 = vadd.f32 1e-05, %v50_v32  ;;  %v49_v36 = vsub.f32 %v45_v34, %v47_v33 }
  0x9b   :  { %2767 = vrsqrt.f32 %v54_v35  ;;  %v51_v37 = vmax.f32 %v49_v36, 0.0 }
  0x9d   :  { %v55_v38 = vadd.f32 1e-05, %v51_v37 }
  0x9f   :  { %2769 = vrsqrt.f32 %v55_v38 }
  0xa5   :  { %v2768_v40 = vpop.eup %2767 }
  0xa6   :  { %v58_v42 = vmul.f32 %v2768_v40, %v52_v39 }
  0xa8   :  { %v65_v45 = vmul.f32 %v2335_v41, %v58_v42 }
  0xa9   :  { %v2770_v46 = vpop.eup %2769 }
  0xaa   :  { %v72_v47 = vadd.f32 %v2336_v43, %v65_v45  ;;  %v59_v48 = vmul.f32 %v2770_v46, %v53_v44 }
  0xac   :  { %2500 = vmatprep.mubr.msk.f32.mxu0 %vm26_vm0, %v72_v47  ;;  %2533 = vmatprep.mubr.msk.f32.mxu1 %vm26_vm0, %v72_v47  ;;  %v66_v51 = vmul.f32 %v2335_v41, %v59_v48 }
  0xae   :  { %v73_v52 = vadd.f32 %v2336_v43, %v66_v51 }
  0xb0   :  { %2501 = vmatmul.mubr.msk.f32.vlgmr.msra.gmra.mrb[0].mxu0 %vm26_vm0, %v73_v52  ;;  %2534 = vmatmul.mubr.msk.f32.vlgmr.msra.gmra.mrb[0].mxu1 %vm26_vm0, %v73_v52 }
  0xb1   :  { %2693 = vmatpush3.bf16.msra.mxu0 %v2690_v22  ;;  %2511 = vmatprep.mubr.msk.f32.mxu0 %vm26_vm0, %v72_v47 }
  0xb2   :  { %2695 = vmatprep.subr.bf16.mxu0 %v2694_v53  ;;  %2553 = vmatprep.mubr.msk.f32.mxu1 %vm2836_vm1, %v2835_v60 }
  0xb5   :  { %2697 = vmatpush3.bf16.msra.mxu0 %v2694_v53 }
  0xb6   :  { %2699 = vmatprep.subr.bf16.mxu0 %v2698_v56 }
  0xb8   :  { %2512 = vmatmul.mubr.msk.f32.vlgmr.msra.gmra.mrb[2].mxu0 %vm26_vm0, %v73_v52 }
  0xb9   :  { %2701 = vmatpush3.bf16.msra.mxu0 %v2698_v56  ;;  %2522 = vmatprep.mubr.msk.f32.mxu0 %vm26_vm0, %v72_v47 }
  0xba   :  { %2703 = vmatprep.subr.bf16.mxu0 %v2702_v59 }
  0xbd   :  { %2705 = vmatpush3.bf16.msra.mxu0 %v2702_v59 }
  0xbe   :  { %2536 = vmatprep.subr.mxu0 %v2835_v60 }
  0xc0   :  { %2523 = vmatmul.mubr.msk.f32.vlgmr.msra.gmra.mrb[4].mxu0 %vm26_vm0, %v73_v52 }
  0xc1   :  { %2538 = vmatprep.mubr.msk.f32.mxu0 %vm2836_vm1, %v2835_v60 }
 0x183   :  { %v2502_v62 = vpop.f32.mrb[0].mxu0  ;;  %v2535_v63 = vpop.f32.mrb[0].mxu1 }
 0x184   :  { %v2970_v2 = vadd.f32 %v2502_v62, %v2337_v61  ;;  %v155_v3 = vpop.f32.mrb[1].mxu0  ;;  %v410_v4 = vpop.f32.mrb[1].mxu1  ;;  %v2997_v17 = vadd.f32 %v2535_v63, %v2358_v16 }
 0x185   :  { %v2972_v5 = vadd.f32 %v2337_v61, %v155_v3  ;;  %v2999_v18 = vadd.f32 %v2358_v16, %v410_v4 }
 0x186   :  { %498 = vrot.lane.b32.xlu1 %v2970_v2, %s2837_s12 }
 0x187   :  { %420 = vrot.lane.b32.xlu0 %v2972_v5, %s2837_s12 }
 0x18b   :  { %v2513_v7 = vpop.f32.mrb[2].mxu0 }
 0x18c   :  { %v240_v8 = vpop.f32.mrb[3].mxu0  ;;  %v2982_v10 = vadd.f32 %v2513_v7, %v2344_v6 }
 0x18d   :  { %v2979_v9 = vadd.f32 %v2344_v6, %v240_v8 }
 0x18f   :  { %575 = vrot.lane.b32.xlu1 %v2979_v9, %s2837_s12 }
 0x193   :  { %v2524_v12 = vpop.f32.mrb[4].mxu0  ;;  %652 = vrot.lane.b32.xlu1 %v2982_v10, %s2837_s12 }
 0x194   :  { %v2988_v13 = vadd.f32 %v2524_v12, %v2351_v11  ;;  %v325_v14 = vpop.f32.mrb[5].mxu0 }
 0x195   :  { %v2990_v15 = vadd.f32 %v2351_v11, %v325_v14 }
 0x197   :  { %806 = vrot.lane.b32.xlu1 %v2988_v13, %s2837_s12  ;;  %729 = vrot.lane.b32.xlu0 %v2990_v15, %s2837_s12 }
 0x19b   :  { %960 = vrot.lane.b32.xlu1 %v2997_v17, %s2837_s12  ;;  %883 = vrot.lane.b32.xlu0 %v2999_v18, %s2837_s12 }
 0x1f8   :  { %v499_v20 = vpop.permute.xlu1 %498 }
 0x1f9   :  { %v421_v19 = vpop.permute.xlu0 %420 }
 0x1fa   :  { %2537 = vmatpush3.xpose.msk.msra.mxu0 %vm422_vm2, %v421_v19 }
 0x1fb   :  { %2541 = vmatprep.subr.mxu0 %v2835_v60 }
 0x1fd   :  { %2539 = vmatmul.mubr.msk.f32.vlgmr.msra.gmra.mrb[6].mxu0 %vm422_vm2, %v2972_v5 }
 0x1fe   :  { %2542 = vmatpush3.xpose.msk.msra.mxu0 %vm422_vm2, %v499_v20  ;;  %2543 = vmatprep.mubr.msk.f32.mxu0 %vm2836_vm1, %v2835_v60 }
 0x1ff   :  { %2546 = vmatprep.subr.mxu0 %v2835_v60 }
 0x201   :  { %v576_v21 = vpop.permute.xlu1 %575  ;;  %2544 = vmatmul.mubr.msk.f32.vlgmr.msra.gmra.mrb[8].mxu0 %vm422_vm2, %v2970_v2 }
 0x202   :  { %2547 = vmatpush3.xpose.msk.msra.mxu0 %vm422_vm2, %v576_v21  ;;  %2548 = vmatprep.mubr.msk.f32.mxu0 %vm2836_vm1, %v2835_v60 }
 0x203   :  { %2556 = vmatprep.subr.mxu0 %v2835_v60 }
 0x205   :  { %v653_v22 = vpop.permute.xlu1 %652  ;;  %2549 = vmatmul.mubr.msk.f32.vlgmr.msra.gmra.mrb[10].mxu0 %vm422_vm2, %v2979_v9 }
 0x206   :  { %2552 = vmatpush3.xpose.msk.msra.mxu1 %vm422_vm2, %v653_v22  ;;  %2558 = vmatprep.mubr.msk.f32.mxu0 %vm2836_vm1, %v2835_v60 }
 0x207   :  { %2561 = vmatprep.subr.mxu1 %v2835_v60 }
 0x209   :  { %2554 = vmatmul.mubr.msk.f32.vlgmr.msra.gmra.mrb[2].mxu1 %vm422_vm2, %v2982_v10  ;;  %v807_v23 = vpop.permute.xlu1 %806  ;;  %v730_v24 = vpop.permute.xlu0 %729 }
 0x20a   :  { %2557 = vmatpush3.xpose.msk.msra.mxu0 %vm422_vm2, %v730_v24  ;;  %2562 = vmatpush3.xpose.msk.msra.mxu1 %vm422_vm2, %v807_v23 }
 0x20b   :  { %2563 = vmatprep.mubr.msk.f32.mxu1 %vm2836_vm1, %v2835_v60  ;;  %2571 = vmatprep.subr.mxu1 %v2835_v60 }
 0x20c   :  { %2566 = vmatprep.subr.mxu0 %v2835_v60 }
 0x20d   :  { %2564 = vmatmul.mubr.msk.f32.vlgmr.msra.gmra.mrb[4].mxu1 %vm422_vm2, %v2988_v13  ;;  %v961_v25 = vpop.permute.xlu1 %960  ;;  %2559 = vmatmul.mubr.msk.f32.vlgmr.msra.gmra.mrb[12].mxu0 %vm422_vm2, %v2990_v15  ;;  %v884_v26 = vpop.permute.xlu0 %883 }
 0x20e   :  { %2567 = vmatpush3.xpose.msk.msra.mxu0 %vm422_vm2, %v884_v26  ;;  %2572 = vmatpush3.xpose.msk.msra.mxu1 %vm422_vm2, %v961_v25 }
 0x20f   :  { %2568 = vmatprep.mubr.msk.f32.mxu0 %vm2836_vm1, %v2835_v60  ;;  %2573 = vmatprep.mubr.msk.f32.mxu1 %vm2836_vm1, %v2835_v60 }
 0x210   :  { %2581 = vmatprep.subr.mxu1 %v2835_v60  ;;  %2576 = vmatprep.subr.mxu0 %v2835_v60 }
 0x211   :  { %2569 = vmatmul.mubr.msk.f32.vlgmr.msra.gmra.mrb[14].mxu0 %vm422_vm2, %v2999_v18  ;;  %2574 = vmatmul.mubr.msk.f32.vlgmr.msra.gmra.mrb[6].mxu1 %vm422_vm2, %v2997_v17 }
 0x212   :  { %2578 = vmatprep.mubr.msk.f32.mxu0 %vm2836_vm1, %v2835_v60  ;;  %2583 = vmatprep.mubr.msk.f32.mxu1 %vm2836_vm1, %v2835_v60 }
 0x2d0   :  { %v493_v27 = vpop.f32.mrb[6].mxu0 }
 0x2d1   :  { %v2540_v28 = vpop.f32.mrb[7].mxu0  ;;  %v1036_v29 = vsel %vm422_vm2, %v493_v27, -inf }
 0x2d2   :  { %1037 = vmax.xlane.f32.xlu0 %v1036_v29 }
 0x2d4   :  { %v570_v30 = vpop.f32.mrb[8].mxu0 }
 0x2d5   :  { %v2545_v31 = vpop.f32.mrb[9].mxu0  ;;  %v1039_v32 = vsel %vm422_vm2, %v570_v30, -inf }
 0x2d6   :  { %1040 = vmax.xlane.f32.xlu1 %v1039_v32 }
 0x2d8   :  { %v647_v33 = vpop.f32.mrb[10].mxu0 }
 0x2d9   :  { %v2550_v34 = vpop.f32.mrb[11].mxu0  ;;  %v1042_v43 = vsel %vm422_vm2, %v647_v33, -inf }
 0x2dc   :  { %v724_v35 = vpop.f32.mrb[2].mxu1 }
 0x2dd   :  { %v2555_v36 = vpop.f32.mrb[3].mxu1  ;;  %v1045_v37 = vsel %vm422_vm2, %v724_v35, -inf }
 0x2de   :  { %1046 = vmax.xlane.f32.xlu0 %v1045_v37 }
 0x2e0   :  { %v3054_v38 = vpop.f32.mrb[12].mxu0  ;;  %v3056_v39 = vpop.f32.mrb[4].mxu1 }
 0x2e1   :  { %v2560_v40 = vpop.f32.mrb[13].mxu0  ;;  %v2565_v41 = vpop.f32.mrb[5].mxu1  ;;  %v1051_v42 = vsel %vm422_vm2, %v3056_v39, -inf  ;;  %v1048_v49 = vsel %vm422_vm2, %v3054_v38, -inf }
 0x2e2   :  { %1052 = vmax.xlane.f32.xlu1 %v1051_v42  ;;  %1043 = vmax.xlane.f32.xlu0 %v1042_v43 }
 0x2e4   :  { %v3061_v44 = vpop.f32.mrb[14].mxu0  ;;  %v1032_v45 = vpop.f32.mrb[6].mxu1 }
 0x2e5   :  { %v2570_v46 = vpop.f32.mrb[15].mxu0  ;;  %v2575_v47 = vpop.f32.mrb[7].mxu1  ;;  %v1057_v48 = vsel %vm422_vm2, %v1032_v45, -inf  ;;  %v1054_v50 = vsel %vm422_vm2, %v3061_v44, -inf }
 0x2e6   :  { %1058 = vmax.xlane.f32.xlu1 %v1057_v48  ;;  %1049 = vmax.xlane.f32.xlu0 %v1048_v49 }
 0x2ea   :  { %1055 = vmax.xlane.f32.xlu0 %v1054_v50 }
 0x2f7   :  { %1200 = vrot.lane.b32.xlu1 %v2970_v2, %s2838_s19 }
 0x300   :  { %1124 = vrot.lane.b32.xlu0 %v2972_v5, %s2838_s19 }
 0x35f   :  { %v1038_v51 = vpop.xlane.xlu0 %1037 }
 0x360   :  { %v1060_v52 = vsub.f32 %v493_v27, %v1038_v51 }
 0x362   :  { %v1068_v53 = vmul.f32 1.442695, %v1060_v52 }
 0x363   :  { %v1041_v54 = vpop.xlane.xlu1 %1040 }
 0x364   :  { %2771 = vpow2.f32 %v1068_v53  ;;  %v1061_v55 = vsub.f32 %v570_v30, %v1041_v54 }
 0x366   :  { %v1070_v56 = vmul.f32 1.442695, %v1061_v55 }
 0x368   :  { %2773 = vpow2.f32 %v1070_v56 }
 0x36b   :  { %v1047_v57 = vpop.xlane.xlu0 %1046 }
 0x36c   :  { %v1063_v58 = vsub.f32 %v724_v35, %v1047_v57 }
 0x36e   :  { %v3072_v59 = vpop.eup %2771  ;;  %v1074_v61 = vmul.f32 1.442695, %v1063_v58 }
 0x36f   :  { %v1053_v62 = vpop.xlane.xlu1 %1052  ;;  %v1044_v63 = vpop.xlane.xlu0 %1043  ;;  %v1084_v2 = vsel %vm422_vm2, %v3072_v59, 0.0 }
 0x370   :  { %2775 = vpow2.f32 %v1074_v61  ;;  %v1062_v3 = vsub.f32 %v647_v33, %v1044_v63  ;;  %1085 = vadd.xlane.f32.xlu0 %v1084_v2  ;;  %v1065_v23 = vsub.f32 %v3056_v39, %v1053_v62  ;;  %v1733_v63 = vld [vmem:[%s3275_s3 + $0x8] sm:$0xff]  ;;  %v1732_v2 = vld [vmem:[%s3275_s3] sm:$0xff] }
 0x372   :  { %v2774_v4 = vpop.eup %2773  ;;  %v1072_v5 = vmul.f32 1.442695, %v1062_v3  ;;  %v1078_v26 = vmul.f32 1.442695, %v1065_v23 }
 0x373   :  { %v1059_v6 = vpop.xlane.xlu1 %1058  ;;  %v1050_v7 = vpop.xlane.xlu0 %1049  ;;  %v1087_v8 = vsel %vm422_vm2, %v2774_v4, 0.0 }
 0x374   :  { %1088 = vadd.xlane.f32.xlu1 %v1087_v8  ;;  %2777 = vpow2.f32 %v1072_v5  ;;  %v1064_v22 = vsub.f32 %v3054_v38, %v1050_v7  ;;  %v1067_v24 = vsub.f32 %v1032_v45, %v1059_v6 }
 0x376   :  { %v1076_v25 = vmul.f32 1.442695, %v1064_v22  ;;  %v1082_v28 = vmul.f32 1.442695, %v1067_v24 }
 0x377   :  { %v1201_v11 = vpop.permute.xlu1 %1200  ;;  %v1056_v12 = vpop.xlane.xlu0 %1055 }
 0x378   :  { %2582 = vmatpush3.msra.mxu1 %v1201_v11  ;;  %v1066_v27 = vsub.f32 %v3061_v44, %v1056_v12  ;;  %2779 = vpow2.f32 %v1076_v25  ;;  %v1896_v12 = vld [vmem:[%s3275_s3 + $0x10] sm:$0xff] }
 0x379   :  { %2591 = vmatprep.subr.mxu1 %v2835_v60  ;;  %2781 = vpow2.f32 %v1078_v26  ;;  %v2393_v26 = vld [vmem:[%s3273_s1 + $0x4] ss:$0 sm:$0xff] }
 0x37a   :  { %v3078_v14 = vpop.eup %2775  ;;  %2783 = vpow2.f32 %v1082_v28 }
 0x37b   :  { %v1125_v16 = vpop.permute.xlu0 %1124  ;;  %v1093_v19 = vsel %vm422_vm2, %v3078_v14, 0.0 }
 0x37c   :  { %1094 = vadd.xlane.f32.xlu1 %v1093_v19  ;;  %2577 = vmatpush3.msra.mxu0 %v1125_v16 }
 0x37d   :  { %2586 = vmatprep.subr.mxu0 %v2835_v60 }
 0x37e   :  { %v3083_v20 = vpop.eup %2777 }
 0x37f   :  { %v1090_v21 = vsel %vm422_vm2, %v3083_v20, 0.0 }
 0x380   :  { %1091 = vadd.xlane.f32.xlu0 %v1090_v21 }
 0x38d   :  { %1352 = vrot.lane.b32.xlu1 %v2982_v10, %s2838_s19  ;;  %v1080_v10 = vmul.f32 1.442695, %v1066_v27 }
 0x38f   :  { %2785 = vpow2.f32 %v1080_v10 }
 0x391   :  { %1428 = vrot.lane.b32.xlu1 %v2990_v15, %s2838_s19  ;;  %v2780_v15 = vpop.eup %2779 }
 0x392   :  { %v1096_v29 = vsel %vm422_vm2, %v2780_v15, 0.0 }
 0x395   :  { %1504 = vrot.lane.b32.xlu1 %v2988_v13, %s2838_s19  ;;  %v2782_v13 = vpop.eup %2781 }
 0x396   :  { %1276 = vrot.lane.b32.xlu0 %v2979_v9, %s2838_s19  ;;  %v3099_v9 = vpop.eup %2783  ;;  %v1099_v30 = vsel %vm422_vm2, %v2782_v13, 0.0 }
 0x397   :  { %v1105_v32 = vsel %vm422_vm2, %v3099_v9, 0.0 }
 0x399   :  { %v3102_v31 = vpop.eup %2785 }
 0x39a   :  { %v1102_v33 = vsel %vm422_vm2, %v3102_v31, 0.0 }
 0x3b5   :  { %1097 = vadd.xlane.f32.xlu0 %v1096_v29 }
 0x3b9   :  { %1100 = vadd.xlane.f32.xlu1 %v1099_v30  ;;  %1106 = vadd.xlane.f32.xlu0 %v1105_v32 }
 0x3bd   :  { %1103 = vadd.xlane.f32.xlu1 %v1102_v33  ;;  %v2119_v33 = vld [vmem:[%s3276_s4] sm:$0xff] }
 0x3ce   :  { %1656 = vrot.lane.b32.xlu1 %v2997_v17, %s2838_s19 }
 0x3cf   :  { %1580 = vrot.lane.b32.xlu0 %v2999_v18, %s2838_s19 }
 0x3fd   :  { %v1086_v34 = vpop.xlane.xlu0 %1085 }
 0x3fe   :  { %2787 = vrcp.f32 %v1086_v34  ;;  %v2120_v34 = vld [vmem:[%s3276_s4 + $0x8] sm:$0xff] }
 0x401   :  { %v1089_v35 = vpop.xlane.xlu1 %1088 }
 0x402   :  { %2789 = vrcp.f32 %v1089_v35  ;;  %v2121_v35 = vld [vmem:[%s3276_s4 + $0x10] sm:$0xff] }
 0x408   :  { %v2788_v36 = vpop.eup %2787 }
 0x409   :  { %v1109_v37 = vmul.f32 %v2788_v36, %v3072_v59  ;;  %v1095_v38 = vpop.xlane.xlu1 %1094  ;;  %v2714_v36 = vpack.c.bf16 %v2120_v34, %v2119_v33 }
 0x40a   :  { %2791 = vrcp.f32 %v1095_v38 }
 0x40b   :  { %2579 = vmatmul.mubr.msk.f32.vlgmr.msra.gmra.mrb[16].mxu0 %vm422_vm2, %v1109_v37  ;;  %v2122_v37 = vld [vmem:[%s3276_s4 + $0x18] sm:$0xff] }
 0x40c   :  { %v2790_v39 = vpop.eup %2789  ;;  %2588 = vmatprep.mubr.msk.f32.mxu0 %vm2836_vm1, %v2835_v60  ;;  %v2718_v38 = vpack.c.bf16 %v2122_v37, %v2121_v35 }
 0x40d   :  { %v1111_v40 = vmul.f32 %v2790_v39, %v2774_v4  ;;  %v1353_v17 = vpop.permute.xlu1 %1352  ;;  %v1092_v41 = vpop.xlane.xlu0 %1091  ;;  %v2219_v39 = vld [vmem:[%s3277_s5] sm:$0xff] }
 0x40e   :  { %2793 = vrcp.f32 %v1092_v41 }
 0x40f   :  { %2584 = vmatmul.mubr.msk.f32.vlgmr.msra.gmra.mrb[8].mxu1 %vm422_vm2, %v1111_v40  ;;  %v2220_v40 = vld [vmem:[%s3277_s5 + $0x8] sm:$0xff] }
 0x410   :  { %2592 = vmatpush3.msra.mxu1 %v1353_v17  ;;  %2593 = vmatprep.mubr.msk.f32.mxu1 %vm2836_vm1, %v2835_v60  ;;  %v2722_v17 = vpack.c.bf16 %v2220_v40, %v2219_v39 }
 0x411   :  { %v1429_v18 = vpop.permute.xlu1 %1428  ;;  %2601 = vmatprep.subr.mxu1 %v2835_v60  ;;  %v1277_v42 = vpop.permute.xlu0 %1276 }
 0x412   :  { %2587 = vmatpush3.msra.mxu0 %v1277_v42 }
 0x413   :  { %2596 = vmatprep.subr.mxu0 %v2835_v60 }
 0x414   :  { %v2792_v43 = vpop.eup %2791 }
 0x415   :  { %v1115_v44 = vmul.f32 %v2792_v43, %v3078_v14  ;;  %v1505_v45 = vpop.permute.xlu1 %1504  ;;  %v1980_v14 = vld [vmem:[%s3275_s3 + $0x18] sm:$0xff] }
 0x417   :  { %2594 = vmatmul.mubr.msk.f32.vlgmr.msra.gmra.mrb[10].mxu1 %vm422_vm2, %v1115_v44 }
 0x418   :  { %2602 = vmatpush3.msra.mxu1 %v1505_v45  ;;  %2603 = vmatprep.mubr.msk.f32.mxu1 %vm2836_vm1, %v2835_v60  ;;  %v2794_v46 = vpop.eup %2793 }
 0x419   :  { %2611 = vmatprep.subr.mxu1 %v2835_v60  ;;  %v1113_v47 = vmul.f32 %v2794_v46, %v3083_v20 }
 0x41b   :  { %2589 = vmatmul.mubr.msk.f32.vlgmr.msra.gmra.mrb[18].mxu0 %vm422_vm2, %v1113_v47 }
 0x41c   :  { %2597 = vmatpush3.msra.mxu0 %v1429_v18  ;;  %2598 = vmatprep.mubr.msk.f32.mxu0 %vm2836_vm1, %v2835_v60 }
 0x41d   :  { %2606 = vmatprep.subr.mxu0 %v2835_v60 }
 0x442   :  { %v1098_v48 = vpop.xlane.xlu0 %1097 }
 0x443   :  { %2795 = vrcp.f32 %v1098_v48 }
 0x446   :  { %v1101_v49 = vpop.xlane.xlu1 %1100  ;;  %v1107_v50 = vpop.xlane.xlu0 %1106 }
 0x447   :  { %2797 = vrcp.f32 %v1101_v49 }
 0x448   :  { %2799 = vrcp.f32 %v1107_v50 }
 0x44a   :  { %v1104_v51 = vpop.xlane.xlu1 %1103  ;;  %v1581_v55 = vpop.permute.xlu0 %1580 }
 0x44b   :  { %2801 = vrcp.f32 %v1104_v51 }
 0x44d   :  { %v2796_v52 = vpop.eup %2795 }
 0x44e   :  { %v1117_v53 = vmul.f32 %v2796_v52, %v2780_v15  ;;  %v1657_v58 = vpop.permute.xlu1 %1656 }
 0x450   :  { %2599 = vmatmul.mubr.msk.f32.vlgmr.msra.gmra.mrb[20].mxu0 %vm422_vm2, %v1117_v53 }
 0x451   :  { %v2798_v54 = vpop.eup %2797  ;;  %2607 = vmatpush3.msra.mxu0 %v1581_v55  ;;  %2608 = vmatprep.mubr.msk.f32.mxu0 %vm2836_vm1, %v2835_v60 }
 0x452   :  { %v1119_v56 = vmul.f32 %v2798_v54, %v2782_v13  ;;  %v2800_v57 = vpop.eup %2799  ;;  %2616 = vmatprep.subr.mxu0 %v1733_v63 }
 0x453   :  { %v1123_v61 = vmul.f32 %v2800_v57, %v3099_v9 }
 0x454   :  { %2604 = vmatmul.mubr.msk.f32.vlgmr.msra.gmra.mrb[12].mxu1 %vm422_vm2, %v1119_v56 }
 0x455   :  { %v2802_v59 = vpop.eup %2801  ;;  %2612 = vmatpush3.msra.mxu1 %v1657_v58  ;;  %2613 = vmatprep.mubr.msk.f32.mxu1 %vm2836_vm1, %v2835_v60  ;;  %v2394_v58 = vld [vmem:[%s3273_s1 + $0x2] ss:$0 sm:$0xff] }
 0x456   :  { %v1121_v62 = vmul.f32 %v2802_v59, %v3102_v31  ;;  %2715 = vmatprep.subr.bf16.mxu1 %v2714_v36 }
 0x458   :  { %2609 = vmatmul.mubr.msk.f32.vlgmr.msra.gmra.mrb[22].mxu0 %vm422_vm2, %v1121_v62  ;;  %2614 = vmatmul.mubr.msk.f32.vlgmr.msra.gmra.mrb[14].mxu1 %vm422_vm2, %v1123_v61  ;;  %v2395_v61 = vld [vmem:[%s3273_s1 + $0x3] ss:$0 sm:$0xff] }
 0x459   :  { %2617 = vmatpush3.msra.mxu0 %v1733_v63  ;;  %2717 = vmatpush3.bf16.msra.mxu1 %v2714_v36 }
 0x45a   :  { %2621 = vmatprep.subr.mxu0 %v1732_v2  ;;  %2719 = vmatprep.subr.bf16.mxu1 %v2718_v38 }
 0x45d   :  { %2721 = vmatpush3.bf16.msra.mxu1 %v2718_v38 }
 0x45e   :  { %2723 = vmatprep.subr.bf16.mxu1 %v2722_v17 }
 0x4de   :  { %v1196_v60 = vpop.f32.mrb[16].mxu0 }
 0x4df   :  { %v2580_v3 = vpop.f32.mrb[17].mxu0 }
 0x4e2   :  { %v1272_v4 = vpop.f32.mrb[8].mxu1 }
 0x4e3   :  { %v2585_v5 = vpop.f32.mrb[9].mxu1 }
 0x4e4   :  { %v2222_v5 = vld [vmem:[%s3277_s5 + $0x18] sm:$0xff] }
 0x4ea   :  { %v1424_v6 = vpop.f32.mrb[10].mxu1 }
 0x4eb   :  { %v2595_v7 = vpop.f32.mrb[11].mxu1 }
 0x4ee   :  { %v1348_v8 = vpop.f32.mrb[18].mxu0 }
 0x4ef   :  { %v2590_v11 = vpop.f32.mrb[19].mxu0  ;;  %2618 = vmatprep.mubr.msk.f32.mxu0 %vm422_vm2, %v1348_v8 }
 0x4f0   :  { %2619 = vmatmul.mubr.msk.f32.vlgmr.msra.gmra.mrb[24].mxu0 %vm422_vm2, %v1424_v6  ;;  %v2223_v11 = vld [vmem:[%s3277_s5 + $0x20] sm:$0xff] }
 0x4f1   :  { %2623 = vmatprep.mubr.msk.f32.mxu0 %vm422_vm2, %v1196_v60  ;;  %2622 = vmatpush3.msra.mxu0 %v1732_v2 }
 0x4f2   :  { %2626 = vmatprep.subr.mxu0 %v1896_v12 }
 0x4f8   :  { %2624 = vmatmul.mubr.msk.f32.vlgmr.msra.gmra.mrb[24].mxu0 %vm422_vm2, %v1272_v4  ;;  %v2221_v4 = vld [vmem:[%s3277_s5 + $0x10] sm:$0xff] }
 0x4f9   :  { %2627 = vmatpush3.msra.mxu0 %v1896_v12  ;;  %v2726_v8 = vpack.c.bf16 %v2222_v5, %v2221_v4  ;;  %v2224_v12 = vld [vmem:[%s3277_s5 + $0x28] sm:$0xff] }
 0x4fa   :  { %2631 = vmatprep.subr.mxu0 %v1980_v14 }
 0x523   :  { %v1500_v16 = vpop.f32.mrb[20].mxu0 }
 0x524   :  { %v2600_v19 = vpop.f32.mrb[21].mxu0  ;;  %2628 = vmatprep.mubr.msk.f32.mxu0 %vm422_vm2, %v1500_v16  ;;  %v2225_v16 = vld [vmem:[%s3277_s5 + $0x30] sm:$0xff] }
 0x525   :  { %v2226_v19 = vld [vmem:[%s3277_s5 + $0x38] sm:$0xff] }
 0x527   :  { %v1576_v20 = vpop.f32.mrb[12].mxu1 }
 0x528   :  { %v2605_v21 = vpop.f32.mrb[13].mxu1  ;;  %2629 = vmatmul.mubr.msk.f32.vlgmr.msra.gmra.mrb[24].mxu0 %vm422_vm2, %v1576_v20  ;;  %v2734_v20 = vpack.c.bf16 %v2226_v19, %v2225_v16 }
 0x529   :  { %2632 = vmatpush3.msra.mxu0 %v1980_v14  ;;  %v2730_v14 = vpack.c.bf16 %v2224_v12, %v2223_v11  ;;  %v2227_v21 = vld [vmem:[%s3277_s5 + $0x40] sm:$0xff] }
 0x52b   :  { %v1652_v22 = vpop.f32.mrb[22].mxu0  ;;  %v1728_v23 = vpop.f32.mrb[14].mxu1 }
 0x52c   :  { %v2610_v24 = vpop.f32.mrb[23].mxu0  ;;  %v2615_v25 = vpop.f32.mrb[15].mxu1  ;;  %2633 = vmatprep.mubr.msk.f32.mxu0 %vm422_vm2, %v1652_v22  ;;  %v2228_v22 = vld [vmem:[%s3277_s5 + $0x48] sm:$0xff] }
 0x52d   :  { %v2229_v24 = vld [vmem:[%s3277_s5 + $0x50] sm:$0xff]  ;;  %v2230_v25 = vld [vmem:[%s3277_s5 + $0x58] sm:$0xff] }
 0x530   :  { %2634 = vmatmul.mubr.msk.f32.vlgmr.msra.gmra.mrb[24].mxu0 %vm422_vm2, %v1728_v23  ;;  %v2738_v23 = vpack.c.bf16 %v2228_v22, %v2227_v21 }
 0x603   :  { %v2635_v27 = vpop.f32.mrb[24].mxu0 }
 0x604   :  { %v2070_v28 = vadd.f32 %v2635_v27, %v2393_v26  ;;  %v2053_v10 = vpop.f32.mrb[25].mxu0  ;;  %v2231_v27 = vld [vmem:[%s3277_s5 + $0x60] sm:$0xff] }
 0x605   :  { %v2069_v15 = vadd.f32 %v2393_v26, %v2053_v10  ;;  %v2742_v26 = vpack.c.bf16 %v2230_v25, %v2229_v24 }
 0x606   :  { %v3165_v13 = vadd.f32 %v2070_v28, %v2885_v1  ;;  %v2232_v28 = vld [vmem:[%s3277_s5 + $0x68] sm:$0xff] }
 0x607   :  { %v3168_v29 = vadd.f32 %v2069_v15, %v2880_v0  ;;  %v2746_v10 = vpack.c.bf16 %v2232_v28, %v2231_v27  ;;  %v2233_v15 = vld [vmem:[%s3277_s5 + $0x70] sm:$0xff] }
 0x608   :  { %v2076_v9 = vsel %vm26_vm0, %v3165_v13, 0.0  ;;  %v2082_v1 = vmul.f32 %v3165_v13, %v3165_v13 }
 0x609   :  { %2077 = vadd.xlane.f32.xlu1 %v2076_v9  ;;  %v2073_v30 = vsel %vm26_vm0, %v3168_v29, 0.0  ;;  %v2081_v31 = vmul.f32 %v3168_v29, %v3168_v29  ;;  %v2234_v9 = vld [vmem:[%s3277_s5 + $0x78] sm:$0xff] }
 0x60a   :  { %2074 = vadd.xlane.f32.xlu0 %v2073_v30  ;;  %v2086_v0 = vsel %vm26_vm0, %v2082_v1, 0.0  ;;  %v2750_v30 = vpack.c.bf16 %v2234_v9, %v2233_v15 }
 0x60b   :  { %v2083_v32 = vsel %vm26_vm0, %v2081_v31, 0.0  ;;  %v2396_v31 = vld [vmem:[%s3273_s1 + $0x6] ss:$0 sm:$0xff] }
 0x60e   :  { %2084 = vadd.xlane.f32.xlu0 %v2083_v32 }
 0x612   :  { %2087 = vadd.xlane.f32.xlu0 %v2086_v0 }
 0x696   :  { %v2078_v42 = vpop.xlane.xlu1 %2077 }
 0x697   :  { %v2075_v41 = vpop.xlane.xlu0 %2074  ;;  %v2080_v44 = vmul.f32 0.03125, %v2078_v42  ;;  %v2399_v42 = vld [vmem:[%s3273_s1 + $0x5] ss:$0 sm:$0xff] }
 0x698   :  { %v2079_v18 = vmul.f32 0.03125, %v2075_v41 }
 0x699   :  { %v2092_v49 = vmul.f32 %v2080_v44, %v2080_v44  ;;  %v2098_v62 = vsub.f32 %v3165_v13, %v2080_v44 }
 0x69a   :  { %v2091_v45 = vmul.f32 %v2079_v18, %v2079_v18  ;;  %v2097_v56 = vsub.f32 %v3168_v29, %v2079_v18 }
 0x69b   :  { %v2085_v43 = vpop.xlane.xlu0 %2084 }
 0x69c   :  { %v2089_v46 = vmul.f32 0.03125, %v2085_v43 }
 0x69e   :  { %v2093_v47 = vsub.f32 %v2089_v46, %v2091_v45 }
 0x69f   :  { %v2088_v48 = vpop.xlane.xlu0 %2087 }
 0x6a0   :  { %v2095_v50 = vmax.f32 %v2093_v47, 0.0  ;;  %v2090_v51 = vmul.f32 0.03125, %v2088_v48 }
 0x6a2   :  { %v2099_v52 = vadd.f32 1e-05, %v2095_v50  ;;  %v2094_v53 = vsub.f32 %v2090_v51, %v2092_v49 }
 0x6a4   :  { %2803 = vrsqrt.f32 %v2099_v52  ;;  %v2096_v54 = vmax.f32 %v2094_v53, 0.0 }
 0x6a6   :  { %v2100_v55 = vadd.f32 1e-05, %v2096_v54 }
 0x6a8   :  { %2805 = vrsqrt.f32 %v2100_v55 }
 0x6ae   :  { %v2804_v57 = vpop.eup %2803 }
 0x6af   :  { %v2103_v59 = vmul.f32 %v2804_v57, %v2097_v56 }
 0x6b1   :  { %v2110_v63 = vmul.f32 %v2394_v58, %v2103_v59 }
 0x6b2   :  { %v2806_v2 = vpop.eup %2805 }
 0x6b3   :  { %v2104_v60 = vmul.f32 %v2806_v2, %v2098_v62  ;;  %v2117_v3 = vadd.f32 %v2395_v61, %v2110_v63 }
 0x6b5   :  { %v2111_v6 = vmul.f32 %v2394_v58, %v2104_v60  ;;  %2644 = vmatprep.mubr.msk.f32.mxu1 %vm26_vm0, %v2117_v3 }
 0x6b7   :  { %v2118_v7 = vadd.f32 %v2395_v61, %v2111_v6 }
 0x6b9   :  { %2645 = vmatmul.mubr.msk.f32.vlgmr.msra.gmra.mrb[16].mxu1 %vm26_vm0, %v2118_v7 }
 0x6ba   :  { %2725 = vmatpush3.bf16.msra.mxu1 %v2722_v17 }
 0x6bb   :  { %2727 = vmatprep.subr.bf16.mxu1 %v2726_v8 }
 0x6be   :  { %2729 = vmatpush3.bf16.msra.mxu1 %v2726_v8 }
 0x6bf   :  { %2731 = vmatprep.subr.bf16.mxu1 %v2730_v14 }
 0x6c2   :  { %2733 = vmatpush3.bf16.msra.mxu1 %v2730_v14 }
 0x6c3   :  { %2735 = vmatprep.subr.bf16.mxu1 %v2734_v20 }
 0x6c6   :  { %2737 = vmatpush3.bf16.msra.mxu1 %v2734_v20 }
 0x6c7   :  { %2739 = vmatprep.subr.bf16.mxu1 %v2738_v23 }
 0x6ca   :  { %2741 = vmatpush3.bf16.msra.mxu1 %v2738_v23 }
 0x6cb   :  { %2743 = vmatprep.subr.bf16.mxu1 %v2742_v26 }
 0x6ce   :  { %2745 = vmatpush3.bf16.msra.mxu1 %v2742_v26 }
 0x6cf   :  { %2747 = vmatprep.subr.bf16.mxu1 %v2746_v10 }
 0x6d2   :  { %2749 = vmatpush3.bf16.msra.mxu1 %v2746_v10 }
 0x6d3   :  { %2751 = vmatprep.subr.bf16.mxu1 %v2750_v30 }
 0x6d6   :  { %2753 = vmatpush3.bf16.msra.mxu1 %v2750_v30 }
 0x78c   :  { %v2646_v32 = vpop.f32.mrb[16].mxu1 }
 0x78d   :  { %v2206_v1 = vadd.f32 %v2646_v32, %v2396_v31  ;;  %v2200_v0 = vpop.f32.mrb[17].mxu1 }
 0x78e   :  { %v2201_v33 = vadd.f32 %v2396_v31, %v2200_v0 }
 0x78f   :  { %v2212_v34 = vmul.f32 0.70710677, %v2206_v1  ;;  %v2210_v17 = vmul.f32 0.5, %v2206_v1 }
 0x790   :  { %v2211_v35 = vmul.f32 0.70710677, %v2201_v33  ;;  %v2209_v39 = vmul.f32 0.5, %v2201_v33 }
 0x791   :  { %2807 = verf.f32 %v2212_v34 }
 0x792   :  { %2809 = verf.f32 %v2211_v35 }
 0x79b   :  { %v2808_v36 = vpop.eup %2807 }
 0x79c   :  { %v2810_v37 = vpop.eup %2809  ;;  %v2216_v38 = vadd.f32 1.0, %v2808_v36 }
 0x79d   :  { %v2215_v40 = vadd.f32 1.0, %v2810_v37 }
 0x79e   :  { %v2218_v18 = vmul.f32 %v2216_v38, %v2210_v17 }
 0x79f   :  { %v2217_v41 = vmul.f32 %v2215_v40, %v2209_v39 }
 0x7a1   :  { %2679 = vmatprep.mubr.f32.mxu1 %v2217_v41 }
 0x7a2   :  { %2680 = vmatmul.mubr.f32.vlgmr.msra.gmra.mrb[18].mxu1 %v2218_v18 }
 0x875   :  { %v2681_v43 = vpop.f32.mrb[18].mxu1 }
 0x876   :  { %v2312_v44 = vadd.f32 %v2681_v43, %v2399_v42  ;;  %v2306_v45 = vpop.f32.mrb[19].mxu1 }
 0x877   :  { %v2307_v46 = vadd.f32 %v2399_v42, %v2306_v45 }
 0x878   :  { %v2316_v47 = vadd.f32 %v2312_v44, %v3165_v13 }
 0x879   :  { %v2315_v48 = vadd.f32 %v2307_v46, %v3168_v29 }
 0x87a   :  { %2318 = vst.msk [vmem:[#allocation2 + $0x8] sm:$0xff] %vm26_vm0, %v2316_v47 }
 0x87b   :  { %2317 = vst.msk [vmem:[#allocation2] sm:$0xff] %vm26_vm0, %v2315_v48 }
 0x87c   :  { %2822 = shalt.err (!%p2819_p4)
}
 0x87d   :  { %s2823_s0 = scalar_lea.hbm %s3278_s6, 256 }
 0x87e   :  { %p2824_p5 = scmp.ne.s32.totalorder %s3278_s6, %s2823_s0  ;;  %p2827_p6 = scmp.lt.u32.totalorder %s2823_s0, %s3278_s6 }
 0x880   :  { %p2829_p7 = pnand %p2827_p6, %p2824_p5 }
 0x882   :  { %2832 = shalt.err (!%p2829_p7)
}
 0x883   :  { %s2840_s28 = smov 128   ;;  %s2841_s29 = smov 8  }
 0x884   :  { %2330 = dma.vmem_to_hbm [thread:$0]  %s2325_s22, 256, %s3278_s6, [#allocation3], %s2840_s28, %s2840_s28, %s2841_s29  }
 0x885   :  { %2833 = dma.done.wait [#allocation3], 256  }
 0x886   :  { %2834 = vsyncadd [#allocation3], 4294967040 }
 0x887   :  { %2334 = vsyncpa [#allocation3], 1 }

</bundles_post_ra>
